<compile_context>
chip_gen: v7x
topology: tpu7x:2x2x1
jax: 0.10.0
libtpu: 0.0.40
codegen_flags: <defaults>
</compile_context>

<pallas_src>
import jax
import jax.numpy as jnp
from jax import lax
from jax.experimental import pallas as pl
from jax.experimental.pallas import tpu as pltpu


def _vmem_capacity_bytes():
    """Physical VMEM per core; used only for tile / limit sizing."""
    try:
        return int(pltpu.get_tpu_info().vmem_capacity_bytes)
    except Exception:  # config query only, never affects math; v7x-safe default
        return 64 * 1024 * 1024


def _supports_single_buffered_blocks():
    """Narrow construction-time feature check for BlockSpec(pipeline_mode=...)."""
    if not hasattr(pl, "Buffered"):
        return False
    try:
        pl.BlockSpec((8, 128), lambda b, t: (0, 0),
                     pipeline_mode=pl.Buffered(buffer_count=1))
    except TypeError:
        return False
    return True


def _pick_time_tile(T, idim, hidden, out_itemsize, vmem_budget, block_t):
    """Largest time tile whose per-step VMEM footprint fits the budget."""
    weights = 2 * hidden * idim * 2                  # bf16 W1 + W2 (single-buffered)
    biases = (hidden + idim) * 128 * 4               # (.,1) f32 blocks, lane-padded

    def step_bytes(tT):
        h_scr = hidden * tT * 2                      # bf16 staged hidden activations
        x_blk = 2 * idim * tT * 2                    # bf16 input, double-buffered
        o_blk = 2 * idim * tT * out_itemsize         # output, double-buffered
        return weights + biases + h_scr + x_blk + o_blk

    candidates = (block_t,) if block_t is not None else (1024, 512, 256, 128)
    for cand in candidates:
        if cand is not None and cand <= T and T % cand == 0 \
                and step_bytes(cand) <= vmem_budget:
            return cand
    return T                                         # small T: one full-width tile


def positionwise_feed_forward(xs, w1, b1, w2, b2, *, block_t=None, block_h=512):
    """Fused FFN.

    xs: (B, idim, 1, T)   input (NCHW, H == 1)
    w1: (hidden, idim)    conv_1 weight (hidden, idim, 1, 1) squeezed
    b1: (hidden,)
    w2: (idim, hidden)    conv_2 weight (idim, hidden, 1, 1) squeezed
    b2: (idim,)
    returns (B, idim, 1, T)
    """
    B, idim, one, T = xs.shape
    assert one == 1
    hidden = w1.shape[0]
    assert w1.shape == (hidden, idim) and w2.shape == (idim, hidden)

    out_dtype = xs.dtype
    out_itemsize = jnp.dtype(out_dtype).itemsize

    # Per-generation VMEM budget (v5e/v6e: 128 MiB physical, v7x: 64 MiB).
    vmem_cap = _vmem_capacity_bytes()
    vmem_limit = max(32 * 1024 * 1024, int(0.75 * vmem_cap))
    vmem_budget = int(0.8 * vmem_limit)

    # Time tile (lane axis) and hidden chunk (staged in bf16 scratch).
    tT = _pick_time_tile(T, idim, hidden, out_itemsize, vmem_budget, block_t)
    assert T % tT == 0, "T must be divisible by the time tile"
    # v7x has 2 TensorCores: make sure the parallel grid has >= 2 steps.
    while B * (T // tT) < 2 and tT > 8 and tT % 2 == 0 and T % (tT // 2) == 0:
        tT //= 2

    hk = min(block_h, hidden)
    assert hidden % hk == 0, "hidden must be divisible by the hidden chunk"
    # bf16 packs 2 rows per sublane: keep dynamic sublane store offsets aligned.
    assert hk == hidden or hk % 16 == 0
    num_chunks = hidden // hk

    # Wrapper-side casts: bf16 activations/weights for the MXU (halves DMA
    # bytes), f32 biases reshaped for sublane/lane broadcast.
    x3 = xs[:, :, 0, :].astype(jnp.bfloat16)                 # (B, idim, T)
    w1b = w1.astype(jnp.bfloat16)
    w2b = w2.astype(jnp.bfloat16)
    b1c = b1.reshape(hidden, 1).astype(jnp.float32)
    b2c = b2.reshape(idim, 1).astype(jnp.float32)

    def kernel(x_ref, w1_ref, b1_ref, w2_ref, b2_ref, o_ref, h_ref):
        # x_ref: (idim, tT) bf16 (batch dim squeezed); weights resident in VMEM.
        # h_ref: (hidden, tT) bf16 scratch holding the ReLU'd hidden activation.
        x = x_ref[...]

        def chunk_body(c, carry):
            lo = pl.multiple_of(c * hk, hk)
            h = jnp.dot(w1_ref[pl.ds(lo, hk), :], x,
                        preferred_element_type=jnp.float32)       # (hk, tT) f32
            h = jnp.maximum(h + b1_ref[pl.ds(lo, hk), :], 0.0)    # bias + ReLU, f32
            h_ref[pl.ds(lo, hk), :] = h.astype(jnp.bfloat16)      # stage once, bf16
            return carry

        lax.fori_loop(0, num_chunks, chunk_body, 0, unroll=True)

        # One long-K (K = hidden) second GEMM; b2 folded into the epilogue.
        y = jnp.dot(w2_ref[...], h_ref[...], preferred_element_type=jnp.float32)
        o_ref[...] = (y + b2_ref[...]).astype(o_ref.dtype)

    single_buf = _supports_single_buffered_blocks()
    if single_buf:
        def wspec(shape):
            return pl.BlockSpec(shape, lambda b, t: (0, 0),
                                pipeline_mode=pl.Buffered(buffer_count=1))
    else:
        # TODO(synk): without pipeline_mode the invariant weights use the
        # default (double-buffered) pipeline; for very large FFNs on v7x move
        # the hidden dim onto a third "arbitrary" grid axis instead.
        def wspec(shape):
            return pl.BlockSpec(shape, lambda b, t: (0, 0))

    grid = (B, T // tT)

    flops = 4 * B * T * idim * hidden                      # two GEMMs, 2 flops/MAC
    bytes_accessed = int(x3.size * 2 + B * idim * T * out_itemsize
                         + (w1b.size + w2b.size) * 2 + (b1c.size + b2c.size) * 4)

    out3 = pl.pallas_call(
        kernel,
        out_shape=jax.ShapeDtypeStruct((B, idim, T), out_dtype),
        grid_spec=pltpu.PrefetchScalarGridSpec(
            num_scalar_prefetch=0,
            grid=grid,
            in_specs=[
                pl.BlockSpec((None, idim, tT), lambda b, t: (b, 0, t)),  # x slab
                wspec((hidden, idim)),                                   # W1
                wspec((hidden, 1)),                                      # b1
                wspec((idim, hidden)),                                   # W2
                wspec((idim, 1)),                                        # b2
            ],
            out_specs=pl.BlockSpec((None, idim, tT), lambda b, t: (b, 0, t)),
            scratch_shapes=[pltpu.VMEM((hidden, tT), jnp.bfloat16)],
        ),
        compiler_params=pltpu.CompilerParams(
            dimension_semantics=("parallel", "parallel"),
            vmem_limit_bytes=vmem_limit,
        ),
        cost_estimate=pl.CostEstimate(flops=flops, transcendentals=0,
                                      bytes_accessed=bytes_accessed),
    )(x3, w1b, b1c, w2b, b2c)

    return out3[:, :, None, :]


def reference(xs, w1, b1, w2, b2):
    """Pure-JAX f32 reference matching the PyTorch module forward."""
    x = xs[:, :, 0, :]                                                  # (B, idim, T)
    h = jnp.maximum(jnp.einsum("hc,bct->bht", w1, x) + b1[None, :, None], 0.0)
    y = jnp.einsum("ch,bht->bct", w2, h) + b2[None, :, None]
    return y[:, :, None, :]


if __name__ == "__main__":
    B, idim, hidden, T = 2, 4, 32, 16

    key = jax.random.PRNGKey(0)
    kx, k1, kb1, k2, kb2 = jax.random.split(key, 5)

    xs = jax.random.normal(kx, (B, idim, 1, T), dtype=jnp.float32)
    # conv_1: Conv2d(idim, hidden, 1x1) weight (hidden, idim, 1, 1) -> (hidden, idim)
    w1 = jax.random.normal(k1, (hidden, idim), dtype=jnp.float32) / jnp.sqrt(idim)
    b1 = jax.random.normal(kb1, (hidden,), dtype=jnp.float32) * 0.1
    # conv_2: Conv2d(hidden, idim, 1x1) weight (idim, hidden, 1, 1) -> (idim, hidden)
    w2 = jax.random.normal(k2, (idim, hidden), dtype=jnp.float32) / jnp.sqrt(hidden)
    b2 = jax.random.normal(kb2, (idim,), dtype=jnp.float32) * 0.1

    out = positionwise_feed_forward(xs, w1, b1, w2, b2)
    out = jax.block_until_ready(out)

    ref = reference(xs, w1, b1, w2, b2)
    assert out.shape == (B, idim, 1, T)
    # bf16 MXU operands (x, h, weights) with f32 accumulation vs f32 reference.
    err = float(jnp.max(jnp.abs(out - ref)))
    assert jnp.allclose(out, ref, atol=5e-2, rtol=5e-2), f"max abs err {err}"

    print("KERNEL_OK")
</pallas_src>

<mosaic_0001>
module attributes {stable_mosaic.version = 11 : i64} {
  func.func @kernel(%arg0: i32, %arg1: i32, %arg2: memref<1x4x16xbf16, #tpu.memory_space<vmem>>, %arg3: memref<32x4xbf16, #tpu.memory_space<vmem>>, %arg4: memref<32x1xf32, #tpu.memory_space<vmem>>, %arg5: memref<4x32xbf16, #tpu.memory_space<vmem>>, %arg6: memref<4x1xf32, #tpu.memory_space<vmem>>, %arg7: memref<1x4x16xf32, #tpu.memory_space<vmem>>, %arg8: memref<32x16xbf16, #tpu.memory_space<vmem>>) attributes {dimension_semantics = [#tpu.dimension_semantics<parallel>, #tpu.dimension_semantics<parallel>], iteration_bounds = array<i64: 2, 1>, scalar_prefetch = 0 : i64, scratch_operands = 1 : i64, tpu.core_type = #tpu.core_type<tc>, window_params = [{transform_indices = @transform_0, window_bounds = array<i64: 1, 4, 16>}, {pipeline_mode = #tpu.pipeline_mode<synchronous>, transform_indices = @transform_1, window_bounds = array<i64: 32, 4>}, {pipeline_mode = #tpu.pipeline_mode<synchronous>, transform_indices = @transform_2, window_bounds = array<i64: 32, 1>}, {pipeline_mode = #tpu.pipeline_mode<synchronous>, transform_indices = @transform_3, window_bounds = array<i64: 4, 32>}, {pipeline_mode = #tpu.pipeline_mode<synchronous>, transform_indices = @transform_4, window_bounds = array<i64: 4, 1>}, {transform_indices = @transform_5, window_bounds = array<i64: 1, 4, 16>}]} {
    %c0 = arith.constant 0 : index
    %c0_0 = arith.constant 0 : index
    %c0_1 = arith.constant 0 : index
    %0 = vector.load %arg2[%c0, %c0_0, %c0_1] : memref<1x4x16xbf16, #tpu.memory_space<vmem>>, vector<1x4x16xbf16>
    %1 = vector.shape_cast %0 : vector<1x4x16xbf16> to vector<4x16xbf16>
    %c0_i32 = arith.constant 0 : i32
    %c32_i32 = arith.constant 32 : i32
    %2 = arith.muli %c0_i32, %c32_i32 : i32
    %3 = tpu.assume_multiple %2, 32 : i32
    %4 = arith.index_cast %3 : i32 to index
    %c0_2 = arith.constant 0 : index
    %5 = vector.load %arg3[%4, %c0_2] : memref<32x4xbf16, #tpu.memory_space<vmem>>, vector<32x4xbf16>
    %cst = arith.constant dense<0.000000e+00> : vector<32x16xf32>
    %6 = tpu.matmul %5, %1, %cst {dimension_numbers = #tpu.dot_dimension_numbers<[1], [0], [0], [1], [0, 0, 1, 1], [], []>} : vector<32x4xbf16>, vector<4x16xbf16>, vector<32x16xf32> -> vector<32x16xf32>
    %7 = arith.index_cast %3 : i32 to index
    %c0_3 = arith.constant 0 : index
    %8 = vector.load %arg4[%7, %c0_3] : memref<32x1xf32, #tpu.memory_space<vmem>>, vector<32x1xf32>
    %9 = vector.broadcast %8 : vector<32x1xf32> to vector<32x16xf32>
    %10 = arith.addf %6, %9 : vector<32x16xf32>
    %cst_4 = arith.constant 0.000000e+00 : f32
    %11 = vector.broadcast %cst_4 : f32 to vector<32x16xf32>
    %12 = arith.maximumf %10, %11 : vector<32x16xf32>
    %13 = arith.truncf %12 : vector<32x16xf32> to vector<32x16xbf16>
    %14 = arith.index_cast %3 : i32 to index
    %c0_5 = arith.constant 0 : index
    %15 = vector.load %arg8[%14, %c0_5] : memref<32x16xbf16, #tpu.memory_space<vmem>>, vector<32x16xbf16>
    tpu.vector_store %arg8[%14, %c0_5], %13 {strides = array<i32>} : memref<32x16xbf16, #tpu.memory_space<vmem>>, vector<32x16xbf16>,
    %c1_i32 = arith.constant 1 : i32
    %c0_6 = arith.constant 0 : index
    %c0_7 = arith.constant 0 : index
    %16 = vector.load %arg5[%c0_6, %c0_7] : memref<4x32xbf16, #tpu.memory_space<vmem>>, vector<4x32xbf16>
    %c0_8 = arith.constant 0 : index
    %c0_9 = arith.constant 0 : index
    %17 = vector.load %arg8[%c0_8, %c0_9] : memref<32x16xbf16, #tpu.memory_space<vmem>>, vector<32x16xbf16>
    %cst_10 = arith.constant dense<0.000000e+00> : vector<4x16xf32>
    %18 = tpu.matmul %16, %17, %cst_10 {dimension_numbers = #tpu.dot_dimension_numbers<[1], [0], [0], [1], [0, 0, 1, 1], [], []>} : vector<4x32xbf16>, vector<32x16xbf16>, vector<4x16xf32> -> vector<4x16xf32>
    %c0_11 = arith.constant 0 : index
    %c0_12 = arith.constant 0 : index
    %19 = vector.load %arg6[%c0_11, %c0_12] : memref<4x1xf32, #tpu.memory_space<vmem>>, vector<4x1xf32>
    %20 = vector.broadcast %19 : vector<4x1xf32> to vector<4x16xf32>
    %21 = arith.addf %18, %20 : vector<4x16xf32>
    %c0_13 = arith.constant 0 : index
    %c0_14 = arith.constant 0 : index
    %c0_15 = arith.constant 0 : index
    %22 = vector.load %arg7[%c0_13, %c0_14, %c0_15] : memref<1x4x16xf32, #tpu.memory_space<vmem>>, vector<1x4x16xf32>
    %23 = vector.shape_cast %22 : vector<1x4x16xf32> to vector<4x16xf32>
    %24 = vector.shape_cast %21 : vector<4x16xf32> to vector<1x4x16xf32>
    tpu.vector_store %arg7[%c0_13, %c0_14, %c0_15], %24 {strides = array<i32>} : memref<1x4x16xf32, #tpu.memory_space<vmem>>, vector<1x4x16xf32>,
    return
  }
  func.func @transform_0(%arg0: i32, %arg1: i32) -> (i32, i32, i32) {
    %c0_i32 = arith.constant 0 : i32
    %c0_i32_0 = arith.constant 0 : i32
    return %arg0, %c0_i32, %arg1 : i32, i32, i32
  }
  func.func @transform_1(%arg0: i32, %arg1: i32) -> (i32, i32) {
    %c0_i32 = arith.constant 0 : i32
    %c0_i32_0 = arith.constant 0 : i32
    %c0_i32_1 = arith.constant 0 : i32
    return %c0_i32, %c0_i32_0 : i32, i32
  }
  func.func @transform_2(%arg0: i32, %arg1: i32) -> (i32, i32) {
    %c0_i32 = arith.constant 0 : i32
    %c0_i32_0 = arith.constant 0 : i32
    %c0_i32_1 = arith.constant 0 : i32
    return %c0_i32, %c0_i32_0 : i32, i32
  }
  func.func @transform_3(%arg0: i32, %arg1: i32) -> (i32, i32) {
    %c0_i32 = arith.constant 0 : i32
    %c0_i32_0 = arith.constant 0 : i32
    %c0_i32_1 = arith.constant 0 : i32
    return %c0_i32, %c0_i32_0 : i32, i32
  }
  func.func @transform_4(%arg0: i32, %arg1: i32) -> (i32, i32) {
    %c0_i32 = arith.constant 0 : i32
    %c0_i32_0 = arith.constant 0 : i32
    %c0_i32_1 = arith.constant 0 : i32
    return %c0_i32, %c0_i32_0 : i32, i32
  }
  func.func @transform_5(%arg0: i32, %arg1: i32) -> (i32, i32, i32) {
    %c0_i32 = arith.constant 0 : i32
    %c0_i32_0 = arith.constant 0 : i32
    return %arg0, %c0_i32, %arg1 : i32, i32, i32
  }
}

</mosaic_0001>

<bundles_post_ra>
// kernel: tpu_custom_call.1
= control target key start
LH: loop header
LB: loop body
LE: loop exit
PB: predicated region body
PF: predicated region fallthrough
CT: control target
= control target key end

     0   :  { %10 = vsyncpa [#allocation4], 0  ;;  %s846_s0 = inlined_call_operand.vmem [shape: bf16[2,4,16], index: 0, kind: input, shape index: {}]   ;;  %s847_s1 = inlined_call_operand.vmem [shape: bf16[32,4], index: 1, kind: input, shape index: {}]   ;;  %s848_s2 = inlined_call_operand.vmem [shape: f32[32,1], index: 2, kind: input, shape index: {}]   ;;  %s849_s3 = inlined_call_operand.vmem [shape: bf16[4,32], index: 3, kind: input, shape index: {}]   ;;  %s850_s4 = inlined_call_operand.vmem [shape: f32[4,1], index: 4, kind: input, shape index: {}]   ;;  %s851_s5 = inlined_call_operand.hbm [shape: f32[2,4,16], index: 5, kind: output, shape index: {}]  }
   0x1   :  { %12 = vsyncpa [#allocation4 + $0x1], 0  ;;  %s708_s18 = smov 0   ;;  %s710_s19 = smov 0  }
   0x2   :  { %s712_s20 = smov 0   ;;  %s714_s21 = smov 0  }
   0x3   :  { %s716_s22 = smov 0   ;;  %s718_s23 = smov 0  }
   0x4 LB: > { %s495_s24 = sadd.s32 4294967295, %s672_s23   ;;  %s496_s25 = sadd.s32 4294967294, %s672_s23   ;;  %s672_s23 = sphi %s718_s23, %s18_s23   ;;  %s668_s22 = sphi %s716_s22, %s858_s22   ;;  %s664_s21 = sphi %s714_s21, %s857_s21   ;;  %s660_s20 = sphi %s712_s20, %s856_s20   ;;  %s656_s19 = sphi %s710_s19, %s855_s19   ;;  %s652_s18 = sphi %s708_s18, %s854_s18  }
   0x5   : > { %s30_s26 = sadd.s32 1, %s668_s22  ;;  %s151_s27 = sadd.s32 1, %s660_s20 }
   0x6   : > { %p32_p0 = scmp.ge.s32.totalorder %s30_s26, 2  ;;  %p161_p1 = scmp.ne.s32.totalorder %s660_s20, %s656_s19 }
   0x7   : > { %p162_p2 = scmp.eq.s32.totalorder %s495_s24, 1  ;;  %p167_p3 = scmp.ne.s32.totalorder %s656_s19, %s652_s18 }
   0x8   : > { %s860_s26 = smov (%p32_p0, %s30_s26), 0  ;;  %p168_p5 = scmp.eq.s32.totalorder %s496_s25, 1 }
   0x9   : > { %p748_p4 = por %p162_p2, %p161_p1  ;;  %s146_s29 = ssub.s32 %s668_s22, %s860_s26 }
   0xa   : > { %p499_p6 = scmp.ge.s32.totalorder %s672_s23, 1  ;;  %p149_p7 = scmp.eq.s32.totalorder %s146_s29, 0 }
   0xb   : > { %p755_p8 = por %p168_p5, %p167_p3  ;;  %p208_p9 = scmp.lt.s32.totalorder %s672_s23, 3 }
   0xc   : > { %s761_s6 = scalar_select %p149_p7, %s660_s20, %s151_s27  }
   0xd   : > { %p209_p10 = pnand %p499_p6, %p208_p9 }
   0xe   : > { %p238_p11 = scmp.lt.s32.totalorder (!%p209_p10), %s664_s21, 1  ;;  %v592_v0 = vld [vmem:[%s847_s1] sm:$0xff] (!%p209_p10)   ;;  %vm285_vm0 = vcmask (!%p209_p10), 31744   ;;  %v674_v2 = vmov (!%p209_p10), 0   ;;  %v253_v3 = vld [vmem:[%s848_s2 + $0x10] sm:$0xff] (!%p209_p10)  ;;  %vm292_vm1 = vcmask (!%p209_p10), 1041408  }
   0xf   : > { %212 = sbr.rel (%p209_p10) target bundleno = 495 (0x1ef), region = 40  ;;  %v251_v1 = vld [vmem:[%s848_s2] sm:$0xff] (!%p209_p10)  ;;  %519 = vmatprep.mubr.msk.bf16.mxu0 (!%p209_p10), %vm285_vm0, %v592_v0  ;;  %590 = vset.pattern.permute.xlu0 (!%p209_p10), %v674_v2  ;;  %v252_v4 = vld [vmem:[%s848_s2 + $0x8] sm:$0xff] (!%p209_p10)  ;;  %v254_v6 = vld [vmem:[%s848_s2 + $0x18] sm:$0xff] (!%p209_p10)  ;;  %v675_v10 = vmov (!%p209_p10), 0.0   ;;  %vm676_vm2 = vmmov (!%p209_p10), 0  }
  0x10   : > { %257 = vperm.xlu0 (!%p209_p10), %590, %v251_v1   ;;  %591 = vset.pattern.permute.xlu1 (!%p209_p10), %v674_v2  ;;  %v593_v8 = vld [vmem:[%s847_s1 + $0x8] sm:$0xff] (!%p209_p10)   ;;  %v357_v9 = vld [vmem:[%s850_s4] sm:$0xf] (!%p209_p10)  ;;  %vm351_vm3 = vcmask (!%p209_p10), 130048   ;;  %vm363_vm4 = vcmask (!%p209_p10), 261120   ;;  %s235_s13 = sand.u32 (!%p209_p10), 1, %s656_s19  }
  0x11   : > { %267 = vperm.xlu1 (!%p209_p10), %591, %v253_v3   ;;  %523 = vmatprep.subr.bf16.mxu1 (!%p209_p10), %v675_v10  ;;  %v354_v31 = vld [vmem:[%s849_s3] sm:$0x3] (!%p209_p10)  ;;  %s508_s15 = sshll.u32 (!%p209_p10), %s664_s21, 6  ;;  %vm407_vm5 = vcmask (!%p209_p10), 125952   ;;  %s677_s7 = smov (!%p209_p10), [#allocation3]  }
  0x12   : > { %527 = vmatprep.mubr.msk.bf16.mxu1 (!%p209_p10), %vm676_vm2, %v675_v10  ;;  %s799_s27 = scalar_lea.hbm (!%p209_p10), %s851_s5, %s508_s15  ;;  %s598_s8 = sshll.u32 (!%p209_p10), %s677_s7, 4  ;;  %s599_s8 = int_to_ptr.vmem [resolvable:$false] %s598_s8 }
  0x14   : > { %262 = vperm.xlu0 (!%p209_p10), %590, %v252_v4  }
  0x15   : > { %272 = vperm.xlu1 (!%p209_p10), %591, %v254_v6  }
  0x16   : > { %s239_s9 = scalar_select %p238_p11, %s664_s21, 1 }
  0x17   : > { %s410_s21 = scalar_lea.sflag [#allocation4], %s235_s13 }
  0x18   : > { %s501_s14 = sshll.u32 %s239_s9, 1  ;;  %360 = vperm.xlu0 %590, %v357_v9   ;;  %s600_s9 = scalar_lea.vmem %s599_s8, 128 }
  0x19   : > { %s244_s17 = scalar_lea.vmem %s846_s0, %s501_s14  ;;  %s500_s14 = sshll.u32 %s235_s13, 2 }
  0x1a   : > { %v246_v5 = vld [vmem:[%s244_s17] sm:$0x3]  ;;  %s237_s16 = scalar_lea.vmem [#allocation3], %s500_s14 }
  0x1b   : > { %531 = vmatprep.subr.msk.bf16.mxu0 %vm292_vm1, %v246_v5  ;;  %v294_v7 = vsel %vm292_vm1, %v246_v5, 0  ;;  %s424_s17 = sshll.u32 %s237_s16, 4  ;;  %s801_s17 = int_to_ptr.vmem [resolvable:$true] %s424_s17 }
  0x1c   : > { %518 = vmatpush3.bf16.msra.mxu0 %v294_v7  ;;  %s594_s29 = scalar_lea.vmem %s801_s17, 64  ;;  %p601_p1 = scmp.lt.s32.totalorder %s801_s17, %s599_s8 }
  0x1d   : > { %p595_p12 = scmp.ne.s32.totalorder %s801_s17, %s594_s29  ;;  %p602_p2 = scmp.lt.s32.totalorder %s600_s9, %s594_s29 }
  0x1f   : > { %520 = vmatmul.mubr.msk.bf16.vlgmr.msra.gmra.mrb[0].mxu0 %vm285_vm0, %v593_v8  ;;  %p596_p13 = pnand %p595_p12, %p748_p4  ;;  %p603_p3 = por %p602_p2, %p601_p1 }
  0x21   : > { %p597_p0 = pneg %p596_p13 }
  0x23   : > { %p604_p5 = pnand %p603_p3, %p597_p0 }
  0x8f   : > { %v258_v12 = vpop.permute.xlu0 %257 }
  0x90   : > { %v268_v11 = vpop.permute.xlu1 %267 }
  0x93   : > { %v263_v19 = vpop.permute.xlu0 %262 }
  0x94   : > { %v273_v14 = vpop.permute.xlu1 %272 }
  0x97   : > { %v361_v32 = vpop.permute.xlu0 %360 }
  0xf2   : > { %v521_v13 = vpop.f32.mrb[0].mxu0 }
  0xf3   : > { %v339_v15 = vadd.f32 %v521_v13, %v268_v11  ;;  %v330_v16 = vpop.f32.mrb[1].mxu0 }
  0xf4   : > { %v331_v17 = vadd.f32 %v330_v16, %v258_v12  ;;  %v522_v18 = vpop.f32.mrb[2].mxu0 }
  0xf5   : > { %v342_v20 = vadd.f32 %v522_v18, %v273_v14  ;;  %v333_v21 = vpop.f32.mrb[3].mxu0  ;;  %v347_v23 = vmax.f32 %v339_v15, 0.0 }
  0xf6   : > { %v334_v22 = vadd.f32 %v333_v21, %v263_v19  ;;  %v345_v25 = vmax.f32 %v331_v17, 0.0 }
  0xf7   : > { %v348_v24 = vmax.f32 %v342_v20, 0.0 }
  0xf8   : > { %v346_v26 = vmax.f32 %v334_v22, 0.0 }
  0xf9   : > { %v350_v27 = vpack.c.bf16 %v348_v24, %v347_v23 }
  0xfa   : > { %v349_v28 = vpack.c.bf16 %v346_v26, %v345_v25 }
  0xfb   : > { %353 = vst.msk [vmem:[#allocation2 + $0x8] sm:$0xff] %vm351_vm3, %v350_v27 }
  0xfc   : > { %352 = vst.msk [vmem:[#allocation2] sm:$0xff] %vm351_vm3, %v349_v28 }
 0x102   : > { %v356_v30 = vld [vmem:[#allocation2 + $0x8] sm:$0xff] }
 0x103   : > { %v355_v29 = vld [vmem:[#allocation2] sm:$0xff] }
 0x104   : > { %524 = vmatpush3.bf16.msra.mxu1 %v355_v29 }
 0x105   : > { %525 = vmatprep.subr.bf16.mxu1 %v675_v10 }
 0x108   : > { %526 = vmatpush3.bf16.msra.mxu1 %v356_v30 }
 0x10b   : > { %528 = vmatmul.mubr.msk.bf16.vlgmr.msra.gmra.mrb[0].mxu1 %vm363_vm4, %v354_v31 }
 0x1de   : > { %v401_v33 = vpop.f32.mrb[0].mxu1 }
 0x1df   : > { %v402_v34 = vadd.f32 %v401_v33, %v361_v32  ;;  %v529_v35 = vpop.f32.mrb[1].mxu1 }
 0x1e0   : > { %v404_v36 = vpop.f32.mrb[2].mxu1 }
 0x1e1   : > { %v530_v37 = vpop.f32.mrb[3].mxu1  ;;  %408 = vst.msk [vmem:[%s237_s16] sm:$0xf] %vm407_vm5, %v402_v34 }
 0x1e2   : > { %607 = shalt.err (!%p604_p5)
}
 0x1e3   : > { %s608_s10 = scalar_lea.hbm %s799_s27, 64  ;;  %s612_s13 = scalar_lea.hbm %s851_s5, 128 }
 0x1e4   : > { %p609_p6 = scmp.ne.s32.totalorder %s799_s27, %s608_s10  ;;  %p613_p10 = scmp.lt.u32.totalorder %s799_s27, %s851_s5 }
 0x1e5   : > { %p614_p11 = scmp.lt.u32.totalorder %s612_s13, %s608_s10  ;;  %p616_p13 = scmp.lt.u32.totalorder %s608_s10, %s799_s27 }
 0x1e6   : > { %p610_p7 = pnand %p609_p6, %p748_p4 }
 0x1e7   : > { %p615_p12 = por %p614_p11, %p613_p10 }
 0x1e8   : > { %p611_p9 = pneg %p610_p7 }
 0x1e9   : > { %p617_p0 = por %p616_p13, %p615_p12 }
 0x1eb   : > { %p618_p1 = pnand %p617_p0, %p611_p9 }
 0x1ed   : > { %621 = shalt.err (!%p618_p1)
}
 0x1ee   : > { %532 = dma.vmem_to_hbm [thread:$0]  (%p748_p4), %s801_s17, 64, %s799_s27, %s410_s21  }
 0x1ef PF: > { %p538_p2 = scmp.ge.s32.totalorder %s672_s23, 2  ;;  %s436_s16 = sand.u32 1, %s652_s18  }
 0x1f0   : > { %s437_s24 = scalar_lea.sflag [#allocation4], %s436_s16 }
 0x1f1   : > { %p535_p3 = pnand %p538_p2, %p755_p8 }
 0x1f3   : > { %647 = dma.done.wait (!%p535_p3), %s437_s24, 64  }
 0x1f4   : > { %649 = vsyncadd (!%p535_p3), %s437_s24, 4294967232  ;;  %s18_s23 = sadd.s32 1, %s672_s23   ;;  %s854_s18 = smov %s656_s19 }
 0x1f5   : > { %p15_p5 = scmp.ge.s32.totalorder %s18_s23, 4   ;;  %s855_s19 = smov %s660_s20 }
 0x1f6   : > { %s856_s20 = smov %s761_s6  ;;  %s857_s21 = smov %s668_s22 }
 0x1f7   : > { %s858_s22 = smov %s860_s26  ;;  %17 = sbr.rel (!%p15_p5) target bundleno = 4 (0x4), region = 75 }
 0x1fe   :  { %442 = vsyncpa [#allocation4], 1 }
 0x1ff   :  { %444 = vsyncpa [#allocation4 + $0x1], 1 }

</bundles_post_ra>
